<compile_context>
chip_gen: v5e
topology: v5e:2x2
jax: 0.10.0
libtpu: 0.0.40
codegen_flags: <defaults>
</compile_context>

<pallas_src>
import jax
import jax.numpy as jnp
from jax.experimental import pallas as pl
from jax.experimental.pallas import tpu as pltpu

# Logical (PyTorch) feature sizes.
D_IN, D_H1, D_H2, D_OUT = 11, 500, 20, 1
# Lane/sublane-aligned sizes used inside the kernel.
K_PAD, H1_PAD, H2_PAD = 16, 512, 128


def _round_up(x, m):
    return (x + m - 1) // m * m


def _mlp_kernel(x_ref, w1_ref, b1_ref, w2_ref, b2_ref, w3_ref, b3_ref, o_ref):
    """One batch tile of the 3-layer MLP; weights are VMEM-resident."""
    x = x_ref[...]                                                    # (TB, 16)

    # fc1 + relu (MXU, f32 accumulation).
    h1 = jnp.dot(x, w1_ref[...], preferred_element_type=jnp.float32) + b1_ref[...]
    h1 = jnp.maximum(h1, 0.0)                                         # (TB, 512) f32

    # fc2 + relu (MXU, f32 accumulation).
    h2 = jnp.dot(h1.astype(w2_ref.dtype), w2_ref[...],
                 preferred_element_type=jnp.float32) + b2_ref[...]
    h2 = jnp.maximum(h2, 0.0)                                         # (TB, 128) f32

    # fc3 (N=1): VPU multiply + lane reduce instead of a 1-lane-wide MXU pass.
    out = jnp.sum(h2 * w3_ref[...], axis=-1, keepdims=True) + b3_ref[0, 0]
    o_ref[...] = out.astype(o_ref.dtype)                              # (TB, 1)


def prepare_params(params, *, use_bf16=True):
    """One-time pad/cast of parameters to TPU-friendly, lane-aligned shapes.

    Zero padding is exact: padded x columns are zero, padded hidden units get
    zero weights and zero bias, so relu(0) = 0 contributes nothing downstream.
    """
    mm = jnp.bfloat16 if use_bf16 else jnp.float32
    w1 = jnp.zeros((K_PAD, H1_PAD), mm).at[:D_IN, :D_H1].set(params["w1"].astype(mm))
    b1 = jnp.zeros((1, H1_PAD), jnp.float32).at[:, :D_H1].set(params["b1"].reshape(1, D_H1))
    w2 = jnp.zeros((H1_PAD, H2_PAD), mm).at[:D_H1, :D_H2].set(params["w2"].astype(mm))
    b2 = jnp.zeros((1, H2_PAD), jnp.float32).at[:, :D_H2].set(params["b2"].reshape(1, D_H2))
    w3 = jnp.zeros((1, H2_PAD), jnp.float32).at[:, :D_H2].set(params["w3"].reshape(1, D_H2))
    b3 = params["b3"].reshape(1, 1).astype(jnp.float32)
    return {"w1": w1, "b1": b1, "w2": w2, "b2": b2, "w3": w3, "b3": b3}


def regression_net_forward(x, prepared, *, block_b=1024):
    """x: (B, 11) float32.  prepared: output of prepare_params().  Returns (B, 1) f32."""
    B = x.shape[0]
    mm_dtype = prepared["w1"].dtype

    TB = min(block_b, _round_up(B, 128))          # batch tile (multiple of 128)
    B_pad = _round_up(B, TB)
    grid = (B_pad // TB,)

    # Pad batch to a tile multiple, features 11 -> 16, and cast once to the
    # matmul input dtype (bf16 halves HBM traffic for x on v6e/v7x).
    x_pad = jnp.zeros((B_pad, K_PAD), mm_dtype).at[:B, :D_IN].set(x.astype(mm_dtype))

    wbytes = sum(int(prepared[k].size) * prepared[k].dtype.itemsize
                 for k in ("w1", "b1", "w2", "b2", "w3", "b3"))
    cost = pl.CostEstimate(
        flops=2 * B_pad * (K_PAD * H1_PAD + H1_PAD * H2_PAD + H2_PAD),
        transcendentals=0,
        bytes_accessed=int(x_pad.size) * x_pad.dtype.itemsize + 4 * B_pad + wbytes,
    )

    out = pl.pallas_call(
        _mlp_kernel,
        out_shape=jax.ShapeDtypeStruct((B_pad, 1), jnp.float32),
        grid=grid,
        in_specs=[
            # Batch-tiled activations: double-buffered HBM<->VMEM pipeline.
            pl.BlockSpec((TB, K_PAD), lambda i: (i, 0)),
            # Weights/biases: constant block index -> fetched once, stay resident.
            pl.BlockSpec((K_PAD, H1_PAD), lambda i: (0, 0)),
            pl.BlockSpec((1, H1_PAD), lambda i: (0, 0)),
            pl.BlockSpec((H1_PAD, H2_PAD), lambda i: (0, 0)),
            pl.BlockSpec((1, H2_PAD), lambda i: (0, 0)),
            pl.BlockSpec((1, H2_PAD), lambda i: (0, 0)),
            # Scalar fc3 bias lives in SMEM (scalar path).
            pl.BlockSpec(memory_space=pltpu.MemorySpace.SMEM),
        ],
        out_specs=pl.BlockSpec((TB, 1), lambda i: (i, 0)),
        compiler_params=pltpu.CompilerParams(
            # Independent batch tiles: shard the grid across TensorCores (v7x megacore).
            dimension_semantics=("parallel",),
        ),
        cost_estimate=cost,
    )(
        x_pad,
        prepared["w1"], prepared["b1"],
        prepared["w2"], prepared["b2"],
        prepared["w3"], prepared["b3"],
    )
    return out[:B]


def init_params(key):
    """Deterministic init matching PyTorch Linear shapes (stored as (in, out))."""
    ks = jax.random.split(key, 6)

    def linear(kw, kb, fan_in, fan_out):
        bound = 1.0 / jnp.sqrt(fan_in)
        w = jax.random.uniform(kw, (fan_in, fan_out), jnp.float32, -bound, bound)
        b = jax.random.uniform(kb, (1, fan_out), jnp.float32, -bound, bound)
        return w, b

    w1, b1 = linear(ks[0], ks[1], D_IN, D_H1)
    w2, b2 = linear(ks[2], ks[3], D_H1, D_H2)
    w3, b3 = linear(ks[4], ks[5], D_H2, D_OUT)
    return {"w1": w1, "b1": b1, "w2": w2, "b2": b2, "w3": w3, "b3": b3}


def _reference(x, p):
    h1 = jnp.maximum(x @ p["w1"] + p["b1"], 0.0)
    h2 = jnp.maximum(h1 @ p["w2"] + p["b2"], 0.0)
    return h2 @ p["w3"] + p["b3"]


if __name__ == "__main__":
    key = jax.random.PRNGKey(0)
    k_params, k_x = jax.random.split(key)

    params = init_params(k_params)
    # Small batch of wine-quality-style feature vectors (11 features each).
    x = jax.random.normal(k_x, (8, 11), jnp.float32)

    ref = _reference(x, params)

    # f32 MXU-input path: should match the XLA reference closely.
    out_f32 = regression_net_forward(x, prepare_params(params, use_bf16=False))
    out_f32 = jax.block_until_ready(out_f32)
    assert out_f32.shape == (8, 1)
    assert jnp.allclose(out_f32, ref, atol=1e-3, rtol=1e-3)

    # bf16 MXU-input / f32-accumulate fast path (v6e/v7x): looser tolerance.
    out_bf16 = regression_net_forward(x, prepare_params(params, use_bf16=True))
    out_bf16 = jax.block_until_ready(out_bf16)
    assert out_bf16.shape == (8, 1)
    assert jnp.allclose(out_bf16, ref, atol=5e-2, rtol=5e-2)

    print("KERNEL_OK")
</pallas_src>

<mosaic_0001>
module attributes {stable_mosaic.version = 11 : i64} {
  func.func @_mlp_kernel(%arg0: i32, %arg1: memref<128x16xf32, #tpu.memory_space<vmem>>, %arg2: memref<16x512xf32, #tpu.memory_space<vmem>>, %arg3: memref<1x512xf32, #tpu.memory_space<vmem>>, %arg4: memref<512x128xf32, #tpu.memory_space<vmem>>, %arg5: memref<1x128xf32, #tpu.memory_space<vmem>>, %arg6: memref<1x128xf32, #tpu.memory_space<vmem>>, %arg7: memref<1x1xf32, #tpu.memory_space<smem>>, %arg8: memref<128x1xf32, #tpu.memory_space<vmem>>) attributes {dimension_semantics = [#tpu.dimension_semantics<parallel>], iteration_bounds = array<i64: 1>, scalar_prefetch = 0 : i64, scratch_operands = 0 : i64, tpu.core_type = #tpu.core_type<tc>, window_params = [{transform_indices = @transform_0, window_bounds = array<i64: 128, 16>}, {pipeline_mode = #tpu.pipeline_mode<synchronous>, transform_indices = @transform_1, window_bounds = array<i64: 16, 512>}, {pipeline_mode = #tpu.pipeline_mode<synchronous>, transform_indices = @transform_2, window_bounds = array<i64: 1, 512>}, {pipeline_mode = #tpu.pipeline_mode<synchronous>, transform_indices = @transform_3, window_bounds = array<i64: 512, 128>}, {pipeline_mode = #tpu.pipeline_mode<synchronous>, transform_indices = @transform_4, window_bounds = array<i64: 1, 128>}, {pipeline_mode = #tpu.pipeline_mode<synchronous>, transform_indices = @transform_5, window_bounds = array<i64: 1, 128>}, {transform_indices = @transform_6, window_bounds = array<i64: 1, 1>}, {transform_indices = @transform_7, window_bounds = array<i64: 128, 1>}]} {
    %c0 = arith.constant 0 : index
    %c0_0 = arith.constant 0 : index
    %0 = vector.load %arg1[%c0, %c0_0] : memref<128x16xf32, #tpu.memory_space<vmem>>, vector<128x16xf32>
    %c0_1 = arith.constant 0 : index
    %c0_2 = arith.constant 0 : index
    %1 = vector.load %arg2[%c0_1, %c0_2] : memref<16x512xf32, #tpu.memory_space<vmem>>, vector<16x512xf32>
    %cst = arith.constant dense<0.000000e+00> : vector<128x512xf32>
    %2 = tpu.matmul %0, %1, %cst {dimension_numbers = #tpu.dot_dimension_numbers<[1], [0], [0], [1], [0, 0, 1, 1], [], []>} : vector<128x16xf32>, vector<16x512xf32>, vector<128x512xf32> -> vector<128x512xf32>
    %c0_3 = arith.constant 0 : index
    %c0_4 = arith.constant 0 : index
    %3 = vector.load %arg3[%c0_3, %c0_4] : memref<1x512xf32, #tpu.memory_space<vmem>>, vector<1x512xf32>
    %4 = vector.broadcast %3 : vector<1x512xf32> to vector<128x512xf32>
    %5 = arith.addf %2, %4 : vector<128x512xf32>
    %cst_5 = arith.constant 0.000000e+00 : f32
    %6 = vector.broadcast %cst_5 : f32 to vector<128x512xf32>
    %7 = arith.maximumf %5, %6 : vector<128x512xf32>
    %c0_6 = arith.constant 0 : index
    %c0_7 = arith.constant 0 : index
    %8 = vector.load %arg4[%c0_6, %c0_7] : memref<512x128xf32, #tpu.memory_space<vmem>>, vector<512x128xf32>
    %cst_8 = arith.constant dense<0.000000e+00> : vector<128x128xf32>
    %9 = tpu.matmul %7, %8, %cst_8 {dimension_numbers = #tpu.dot_dimension_numbers<[1], [0], [0], [1], [0, 0, 1, 1], [], []>} : vector<128x512xf32>, vector<512x128xf32>, vector<128x128xf32> -> vector<128x128xf32>
    %c0_9 = arith.constant 0 : index
    %c0_10 = arith.constant 0 : index
    %10 = vector.load %arg5[%c0_9, %c0_10] : memref<1x128xf32, #tpu.memory_space<vmem>>, vector<1x128xf32>
    %11 = vector.broadcast %10 : vector<1x128xf32> to vector<128x128xf32>
    %12 = arith.addf %9, %11 : vector<128x128xf32>
    %cst_11 = arith.constant 0.000000e+00 : f32
    %13 = vector.broadcast %cst_11 : f32 to vector<128x128xf32>
    %14 = arith.maximumf %12, %13 : vector<128x128xf32>
    %c0_12 = arith.constant 0 : index
    %c0_13 = arith.constant 0 : index
    %15 = vector.load %arg6[%c0_12, %c0_13] : memref<1x128xf32, #tpu.memory_space<vmem>>, vector<1x128xf32>
    %16 = vector.broadcast %15 : vector<1x128xf32> to vector<128x128xf32>
    %17 = arith.mulf %14, %16 : vector<128x128xf32>
    %cst_14 = arith.constant dense<0.000000e+00> : vector<128xf32>
    %18 = vector.multi_reduction <add>, %17, %cst_14 [1] : vector<128x128xf32> to vector<128xf32>
    %19 = vector.shape_cast %18 : vector<128xf32> to vector<128x1xf32>
    %c0_15 = arith.constant 0 : index
    %c0_16 = arith.constant 0 : index
    %20 = memref.load %arg7[%c0_15, %c0_16] : memref<1x1xf32, #tpu.memory_space<smem>>
    %21 = vector.broadcast %20 : f32 to vector<128x1xf32>
    %22 = arith.addf %19, %21 : vector<128x1xf32>
    %c0_17 = arith.constant 0 : index
    %c0_18 = arith.constant 0 : index
    %23 = vector.load %arg8[%c0_17, %c0_18] : memref<128x1xf32, #tpu.memory_space<vmem>>, vector<128x1xf32>
    tpu.vector_store %arg8[%c0_17, %c0_18], %22 {strides = array<i32>} : memref<128x1xf32, #tpu.memory_space<vmem>>, vector<128x1xf32>,
    return
  }
  func.func @transform_0(%arg0: i32) -> (i32, i32) {
    %c0_i32 = arith.constant 0 : i32
    %c0_i32_0 = arith.constant 0 : i32
    return %arg0, %c0_i32 : i32, i32
  }
  func.func @transform_1(%arg0: i32) -> (i32, i32) {
    %c0_i32 = arith.constant 0 : i32
    %c0_i32_0 = arith.constant 0 : i32
    %c0_i32_1 = arith.constant 0 : i32
    return %c0_i32, %c0_i32_0 : i32, i32
  }
  func.func @transform_2(%arg0: i32) -> (i32, i32) {
    %c0_i32 = arith.constant 0 : i32
    %c0_i32_0 = arith.constant 0 : i32
    %c0_i32_1 = arith.constant 0 : i32
    return %c0_i32, %c0_i32_0 : i32, i32
  }
  func.func @transform_3(%arg0: i32) -> (i32, i32) {
    %c0_i32 = arith.constant 0 : i32
    %c0_i32_0 = arith.constant 0 : i32
    %c0_i32_1 = arith.constant 0 : i32
    return %c0_i32, %c0_i32_0 : i32, i32
  }
  func.func @transform_4(%arg0: i32) -> (i32, i32) {
    %c0_i32 = arith.constant 0 : i32
    %c0_i32_0 = arith.constant 0 : i32
    %c0_i32_1 = arith.constant 0 : i32
    return %c0_i32, %c0_i32_0 : i32, i32
  }
  func.func @transform_5(%arg0: i32) -> (i32, i32) {
    %c0_i32 = arith.constant 0 : i32
    %c0_i32_0 = arith.constant 0 : i32
    %c0_i32_1 = arith.constant 0 : i32
    return %c0_i32, %c0_i32_0 : i32, i32
  }
  func.func @transform_6(%arg0: i32) -> (i32, i32) {
    %c0_i32 = arith.constant 0 : i32
    %c0_i32_0 = arith.constant 0 : i32
    %c0_i32_1 = arith.constant 0 : i32
    return %c0_i32, %c0_i32_0 : i32, i32
  }
  func.func @transform_7(%arg0: i32) -> (i32, i32) {
    %c0_i32 = arith.constant 0 : i32
    %c0_i32_0 = arith.constant 0 : i32
    return %arg0, %c0_i32 : i32, i32
  }
}

</mosaic_0001>

<bundles_post_ra>
// kernel: tpu_custom_call.1
= control target key start
LH: loop header
LB: loop body
LE: loop exit
PB: predicated region body
PF: predicated region fallthrough
CT: control target
= control target key end

     0   :  { %13 = vsyncpa [#allocation4], 0  ;;  %s981_s27 = smov [#allocation3]   ;;  %s982_s29 = smov 128   ;;  %s1347_s0 = inlined_call_operand.vmem [shape: f32[128,16], index: 0, kind: input, shape index: {}]   ;;  %s1348_s1 = inlined_call_operand.vmem [shape: f32[16,512], index: 1, kind: input, shape index: {}]   ;;  %s1349_s2 = inlined_call_operand.vmem [shape: f32[1,512], index: 2, kind: input, shape index: {}]   ;;  %s1350_s3 = inlined_call_operand.hbm [shape: f32[512,128], index: 3, kind: input, shape index: {}]   ;;  %s1351_s4 = inlined_call_operand.vmem [shape: f32[1,128], index: 4, kind: input, shape index: {}]   ;;  %s1352_s5 = inlined_call_operand.vmem [shape: f32[1,128], index: 5, kind: input, shape index: {}]   ;;  %s1353_s6 = inlined_call_operand.<no memory space> [shape: f32[1,1], index: 6, kind: input, shape index: {}]   ;;  %s1354_s7 = inlined_call_operand.vmem [shape: f32[128,1], index: 7, kind: output, shape index: {}]  }
   0x1   :  { %s24_s26 = sshll.u32 %s1350_s3, 4  ;;  %s26_s28 = sshll.u32 %s981_s27, 4  ;;  %s25_s26 = int_to_ptr.hbm [resolvable:$true] %s24_s26  ;;  %s27_s28 = int_to_ptr.vmem [resolvable:$true] %s26_s28 }
   0x2   :  { %s983_s30 = smov 8  }
   0x3   :  { %32 = dma.hbm_to_vmem [thread:$0]  %s25_s26, 8192, %s27_s28, [#allocation4], %s982_s29, %s982_s29, %s983_s30  }
   0x4   :  { %979 = dma.done.wait [#allocation4], 8192  }
   0x5   :  { %980 = vsyncadd [#allocation4], 4294959104  ;;  %v65_v0 = vld [vmem:[%s1348_s1 + $0x30] sm:$0xff]  ;;  %v66_v2 = vld [vmem:[%s1348_s1 + $0x38] sm:$0xff]  ;;  %vm77_vm0 = vcmask 130048   ;;  %vm864_vm1 = vcmask 7168  }
   0x6   :  { %v61_v1 = vld [vmem:[%s1348_s1 + $0x10] sm:$0xff]  ;;  %270 = vmatpush.msra.mxu2 %v65_v0  ;;  %335 = vmatpush.msra.mxu3 %v66_v2  ;;  %v43_v3 = vld [vmem:[%s1347_s0] sm:$0xff]  ;;  %v62_v4 = vld [vmem:[%s1348_s1 + $0x18] sm:$0xff] }
   0x7   :  { %v63_v5 = vld [vmem:[%s1348_s1 + $0x20] sm:$0xff]  ;;  %v64_v7 = vld [vmem:[%s1348_s1 + $0x28] sm:$0xff]  ;;  %v497_v8 = vld [vmem:[#allocation3 + $0x178] sm:$0xff] }
   0x8   :  { %140 = vmatpush.msra.mxu0 %v63_v5  ;;  %v59_v6 = vld [vmem:[%s1348_s1] sm:$0xff]  ;;  %271 = vmatpush.msra.mxu2 %v61_v1  ;;  %v60_v9 = vld [vmem:[%s1348_s1 + $0x8] sm:$0xff]  ;;  %v465_v10 = vld [vmem:[#allocation3 + $0x78] sm:$0xff] }
   0x9   :  { %336 = vmatpush.msra.mxu3 %v62_v4  ;;  %918 = vmatmul.msk.f32.vlgmr.msra.gmra.mxu2 %vm77_vm0, %v43_v3  ;;  %v513_v11 = vld [vmem:[#allocation3 + $0x1f8] sm:$0xff]  ;;  %v496_v13 = vld [vmem:[#allocation3 + $0x170] sm:$0xff]  ;;  %v495_v17 = vld [vmem:[#allocation3 + $0x168] sm:$0xff] }
   0xa   :  { %934 = vmatmul.msk.f32.vlgmr.msra.gmra.mxu3 %vm77_vm0, %v43_v3  ;;  %141 = vmatpush.msra.mxu0 %v59_v6  ;;  %v481_v12 = vld [vmem:[#allocation3 + $0xf8] sm:$0xff]  ;;  %v464_v14 = vld [vmem:[#allocation3 + $0x70] sm:$0xff]  ;;  %v44_v18 = vld [vmem:[%s1347_s0 + $0x8] sm:$0xff] }
   0xb   :  { %205 = vmatpush.msra.mxu1 %v64_v7  ;;  %886 = vmatmul.msk.f32.vlgmr.msra.gmra.mxu0 %vm77_vm0, %v43_v3  ;;  %v512_v15 = vld [vmem:[#allocation3 + $0x1f0] sm:$0xff]  ;;  %v463_v19 = vld [vmem:[#allocation3 + $0x68] sm:$0xff]  ;;  %v494_v22 = vld [vmem:[#allocation3 + $0x160] sm:$0xff] }
   0xc   :  { %648 = vmatpush.msrb.mxu2 %v497_v8  ;;  %518 = vmatpush.msrb.mxu0 %v465_v10  ;;  %v480_v16 = vld [vmem:[#allocation3 + $0xf0] sm:$0xff]  ;;  %v511_v20 = vld [vmem:[#allocation3 + $0x1e8] sm:$0xff]  ;;  %v462_v23 = vld [vmem:[#allocation3 + $0x60] sm:$0xff] }
   0xd   :  { %206 = vmatpush.msra.mxu1 %v60_v9  ;;  %713 = vmatpush.msrb.mxu3 %v513_v11  ;;  %v479_v21 = vld [vmem:[#allocation3 + $0xe8] sm:$0xff]  ;;  %v510_v24 = vld [vmem:[#allocation3 + $0x1e0] sm:$0xff]  ;;  %v493_v26 = vld [vmem:[#allocation3 + $0x158] sm:$0xff] }
   0xe   :  { %902 = vmatmul.msk.f32.vlgmr.msra.gmra.mxu1 %vm77_vm0, %v43_v3  ;;  %649 = vmatpush.msrb.mxu2 %v496_v13  ;;  %v478_v25 = vld [vmem:[#allocation3 + $0xe0] sm:$0xff]  ;;  %v461_v27 = vld [vmem:[#allocation3 + $0x58] sm:$0xff]  ;;  %v45_v30 = vld [vmem:[%s1347_s0 + $0x10] sm:$0xff] }
   0xf   :  { %583 = vmatpush.msrb.mxu1 %v481_v12  ;;  %519 = vmatpush.msrb.mxu0 %v464_v14  ;;  %v509_v28 = vld [vmem:[#allocation3 + $0x1d8] sm:$0xff]  ;;  %v492_v31 = vld [vmem:[#allocation3 + $0x150] sm:$0xff]  ;;  %v491_v36 = vld [vmem:[#allocation3 + $0x148] sm:$0xff] }
  0x10   :  { %714 = vmatpush.msrb.mxu3 %v512_v15  ;;  %650 = vmatpush.msrb.mxu2 %v495_v17  ;;  %v477_v29 = vld [vmem:[#allocation3 + $0xd8] sm:$0xff]  ;;  %v460_v32 = vld [vmem:[#allocation3 + $0x50] sm:$0xff]  ;;  %v459_v37 = vld [vmem:[#allocation3 + $0x48] sm:$0xff] }
  0x11   :  { %584 = vmatpush.msrb.mxu1 %v480_v16  ;;  %919 = vmatmul.msk.f32.gmra.mxu2 %vm77_vm0, %v44_v18  ;;  %v508_v33 = vld [vmem:[#allocation3 + $0x1d0] sm:$0xff]  ;;  %v46_v35 = vld [vmem:[%s1347_s0 + $0x18] sm:$0xff]  ;;  %v507_v38 = vld [vmem:[#allocation3 + $0x1c8] sm:$0xff] }
  0x12   :  { %935 = vmatmul.msk.f32.gmra.mxu3 %vm77_vm0, %v44_v18  ;;  %520 = vmatpush.msrb.mxu0 %v463_v19  ;;  %v476_v34 = vld [vmem:[#allocation3 + $0xd0] sm:$0xff]  ;;  %v475_v39 = vld [vmem:[#allocation3 + $0xc8] sm:$0xff]  ;;  %v47_v40 = vld [vmem:[%s1347_s0 + $0x20] sm:$0xff] }
  0x13   :  { %715 = vmatpush.msrb.mxu3 %v511_v20  ;;  %887 = vmatmul.msk.f32.gmra.mxu0 %vm77_vm0, %v44_v18  ;;  %v490_v41 = vld [vmem:[#allocation3 + $0x140] sm:$0xff]  ;;  %v48_v45 = vld [vmem:[%s1347_s0 + $0x28] sm:$0xff]  ;;  %v489_v46 = vld [vmem:[#allocation3 + $0x138] sm:$0xff] }
  0x14   :  { %585 = vmatpush.msrb.mxu1 %v479_v21  ;;  %651 = vmatpush.msrb.mxu2 %v494_v22  ;;  %v458_v42 = vld [vmem:[#allocation3 + $0x40] sm:$0xff]  ;;  %v457_v47 = vld [vmem:[#allocation3 + $0x38] sm:$0xff]  ;;  %v49_v50 = vld [vmem:[%s1347_s0 + $0x30] sm:$0xff] }
  0x15   :  { %521 = vmatpush.msrb.mxu0 %v462_v23  ;;  %716 = vmatpush.msrb.mxu3 %v510_v24  ;;  %v506_v43 = vld [vmem:[#allocation3 + $0x1c0] sm:$0xff]  ;;  %v505_v48 = vld [vmem:[#allocation3 + $0x1b8] sm:$0xff]  ;;  %v488_v51 = vld [vmem:[#allocation3 + $0x130] sm:$0xff] }
  0x16   :  { %903 = vmatmul.msk.f32.gmra.mxu1 %vm77_vm0, %v44_v18  ;;  %652 = vmatpush.msrb.mxu2 %v493_v26  ;;  %v474_v44 = vld [vmem:[#allocation3 + $0xc0] sm:$0xff]  ;;  %v473_v49 = vld [vmem:[#allocation3 + $0xb8] sm:$0xff]  ;;  %v456_v52 = vld [vmem:[#allocation3 + $0x30] sm:$0xff] }
  0x17   :  { %586 = vmatpush.msrb.mxu1 %v478_v25  ;;  %522 = vmatpush.msrb.mxu0 %v461_v27  ;;  %v504_v53 = vld [vmem:[#allocation3 + $0x1b0] sm:$0xff]  ;;  %v50_v55 = vld [vmem:[%s1347_s0 + $0x38] sm:$0xff]  ;;  %v487_v56 = vld [vmem:[#allocation3 + $0x128] sm:$0xff] }
  0x18   :  { %717 = vmatpush.msrb.mxu3 %v509_v28  ;;  %653 = vmatpush.msrb.mxu2 %v492_v31  ;;  %v472_v54 = vld [vmem:[#allocation3 + $0xb0] sm:$0xff]  ;;  %v455_v57 = vld [vmem:[#allocation3 + $0x28] sm:$0xff]  ;;  %v51_v60 = vld [vmem:[%s1347_s0 + $0x40] sm:$0xff] }
  0x19   :  { %587 = vmatpush.msrb.mxu1 %v477_v29  ;;  %920 = vmatmul.msk.f32.gmra.mxu2 %vm77_vm0, %v45_v30  ;;  %v503_v58 = vld [vmem:[#allocation3 + $0x1a8] sm:$0xff]  ;;  %v486_v61 = vld [vmem:[#allocation3 + $0x120] sm:$0xff]  ;;  %v485_v2 = vld [vmem:[#allocation3 + $0x118] sm:$0xff] }
  0x1a   :  { %936 = vmatmul.msk.f32.gmra.mxu3 %vm77_vm0, %v45_v30  ;;  %523 = vmatpush.msrb.mxu0 %v460_v32  ;;  %v471_v59 = vld [vmem:[#allocation3 + $0xa8] sm:$0xff]  ;;  %v454_v62 = vld [vmem:[#allocation3 + $0x20] sm:$0xff]  ;;  %v453_v3 = vld [vmem:[#allocation3 + $0x18] sm:$0xff] }
  0x1b   :  { %888 = vmatmul.msk.f32.gmra.mxu0 %vm77_vm0, %v45_v30  ;;  %718 = vmatpush.msrb.mxu3 %v508_v33  ;;  %v502_v63 = vld [vmem:[#allocation3 + $0x1a0] sm:$0xff]  ;;  %v52_v1 = vld [vmem:[%s1347_s0 + $0x48] sm:$0xff]  ;;  %v501_v4 = vld [vmem:[#allocation3 + $0x198] sm:$0xff] }
  0x1c   :  { %588 = vmatpush.msrb.mxu1 %v476_v34  ;;  %654 = vmatpush.msrb.mxu2 %v491_v36  ;;  %v470_v0 = vld [vmem:[#allocation3 + $0xa0] sm:$0xff]  ;;  %v469_v5 = vld [vmem:[#allocation3 + $0x98] sm:$0xff]  ;;  %v53_v6 = vld [vmem:[%s1347_s0 + $0x50] sm:$0xff] }
  0x1d   :  { %524 = vmatpush.msrb.mxu0 %v459_v37  ;;  %719 = vmatpush.msrb.mxu3 %v507_v38  ;;  %v484_v7 = vld [vmem:[#allocation3 + $0x110] sm:$0xff]  ;;  %v54_v11 = vld [vmem:[%s1347_s0 + $0x58] sm:$0xff]  ;;  %v483_v12 = vld [vmem:[#allocation3 + $0x108] sm:$0xff] }
  0x1e   :  { %904 = vmatmul.msk.f32.gmra.mxu1 %vm77_vm0, %v45_v30  ;;  %655 = vmatpush.msrb.mxu2 %v490_v41  ;;  %v452_v8 = vld [vmem:[#allocation3 + $0x10] sm:$0xff]  ;;  %v451_v13 = vld [vmem:[#allocation3 + $0x8] sm:$0xff]  ;;  %v482_v16 = vld [vmem:[#allocation3 + $0x100] sm:$0xff] }
  0x1f   :  { %589 = vmatpush.msrb.mxu1 %v475_v39  ;;  %525 = vmatpush.msrb.mxu0 %v458_v42  ;;  %v500_v9 = vld [vmem:[#allocation3 + $0x190] sm:$0xff]  ;;  %v499_v14 = vld [vmem:[#allocation3 + $0x188] sm:$0xff]  ;;  %v450_v17 = vld [vmem:[#allocation3] sm:$0xff] }
  0x20   :  { %720 = vmatpush.msrb.mxu3 %v506_v43  ;;  %656 = vmatpush.msrb.mxu2 %v489_v46  ;;  %v468_v10 = vld [vmem:[#allocation3 + $0x90] sm:$0xff]  ;;  %v467_v15 = vld [vmem:[#allocation3 + $0x88] sm:$0xff]  ;;  %v498_v18 = vld [vmem:[#allocation3 + $0x180] sm:$0xff] }
  0x21   :  { %921 = vmatmul.msk.f32.gmra.mxu2 %vm77_vm0, %v46_v35  ;;  %590 = vmatpush.msrb.mxu1 %v474_v44  ;;  %v55_v19 = vld [vmem:[%s1347_s0 + $0x60] sm:$0xff]  ;;  %v56_v20 = vld [vmem:[%s1347_s0 + $0x68] sm:$0xff]  ;;  %v57_v22 = vld [vmem:[%s1347_s0 + $0x70] sm:$0xff] }
  0x22   :  { %937 = vmatmul.msk.f32.gmra.mxu3 %vm77_vm0, %v46_v35  ;;  %526 = vmatpush.msrb.mxu0 %v457_v47  ;;  %v466_v21 = vld [vmem:[#allocation3 + $0x80] sm:$0xff]  ;;  %v58_v23 = vld [vmem:[%s1347_s0 + $0x78] sm:$0xff] }
  0x23   :  { %889 = vmatmul.msk.f32.gmra.mxu0 %vm77_vm0, %v46_v35  ;;  %721 = vmatpush.msrb.mxu3 %v505_v48  ;;  %v67_v24 = vld [vmem:[%s1349_s2] sm:$0xf] }
  0x24   :  { %591 = vmatpush.msrb.mxu1 %v473_v49  ;;  %657 = vmatpush.msrb.mxu2 %v488_v51  ;;  %v1166_v25 = vperm.slane %v67_v24, 0  ;;  %v1168_v26 = vperm.slane %v67_v24, 1  ;;  %v1170_v28 = vperm.slane %v67_v24, 2  ;;  %v1173_v30 = vperm.slane %v67_v24, 3 }
  0x25   :  { %527 = vmatpush.msrb.mxu0 %v456_v52  ;;  %722 = vmatpush.msrb.mxu3 %v504_v53 }
  0x26   :  { %905 = vmatmul.msk.f32.gmra.mxu1 %vm77_vm0, %v46_v35  ;;  %658 = vmatpush.msrb.mxu2 %v487_v56 }
  0x27   :  { %592 = vmatpush.msrb.mxu1 %v472_v54  ;;  %528 = vmatpush.msrb.mxu0 %v455_v57 }
  0x28   :  { %723 = vmatpush.msrb.mxu3 %v503_v58  ;;  %659 = vmatpush.msrb.mxu2 %v486_v61 }
  0x29   :  { %922 = vmatmul.msk.f32.gmra.mxu2 %vm77_vm0, %v47_v40  ;;  %593 = vmatpush.msrb.mxu1 %v471_v59 }
  0x2a   :  { %938 = vmatmul.msk.f32.gmra.mxu3 %vm77_vm0, %v47_v40  ;;  %529 = vmatpush.msrb.mxu0 %v454_v62 }
  0x2b   :  { %890 = vmatmul.msk.f32.gmra.mxu0 %vm77_vm0, %v47_v40  ;;  %724 = vmatpush.msrb.mxu3 %v502_v63 }
  0x2c   :  { %594 = vmatpush.msrb.mxu1 %v470_v0  ;;  %660 = vmatpush.msrb.mxu2 %v485_v2 }
  0x2d   :  { %530 = vmatpush.msrb.mxu0 %v453_v3  ;;  %725 = vmatpush.msrb.mxu3 %v501_v4 }
  0x2e   :  { %906 = vmatmul.msk.f32.gmra.mxu1 %vm77_vm0, %v47_v40  ;;  %661 = vmatpush.msrb.mxu2 %v484_v7 }
  0x2f   :  { %595 = vmatpush.msrb.mxu1 %v469_v5  ;;  %531 = vmatpush.msrb.mxu0 %v452_v8 }
  0x30   :  { %726 = vmatpush.msrb.mxu3 %v500_v9  ;;  %662 = vmatpush.msrb.mxu2 %v483_v12 }
  0x31   :  { %923 = vmatmul.msk.f32.gmra.mxu2 %vm77_vm0, %v48_v45  ;;  %596 = vmatpush.msrb.mxu1 %v468_v10 }
  0x32   :  { %939 = vmatmul.msk.f32.gmra.mxu3 %vm77_vm0, %v48_v45  ;;  %532 = vmatpush.msrb.mxu0 %v451_v13 }
  0x33   :  { %891 = vmatmul.msk.f32.gmra.mxu0 %vm77_vm0, %v48_v45  ;;  %727 = vmatpush.msrb.mxu3 %v499_v14 }
  0x34   :  { %597 = vmatpush.msrb.mxu1 %v467_v15  ;;  %663 = vmatpush.msrb.mxu2 %v482_v16 }
  0x35   :  { %533 = vmatpush.msrb.mxu0 %v450_v17  ;;  %728 = vmatpush.msrb.mxu3 %v498_v18 }
  0x36   :  { %907 = vmatmul.msk.f32.gmra.mxu1 %vm77_vm0, %v48_v45 }
  0x37   :  { %598 = vmatpush.msrb.mxu1 %v466_v21 }
  0x39   :  { %924 = vmatmul.msk.f32.gmra.mxu2 %vm77_vm0, %v49_v50 }
  0x3a   :  { %940 = vmatmul.msk.f32.gmra.mxu3 %vm77_vm0, %v49_v50 }
  0x3b   :  { %892 = vmatmul.msk.f32.gmra.mxu0 %vm77_vm0, %v49_v50 }
  0x3e   :  { %908 = vmatmul.msk.f32.gmra.mxu1 %vm77_vm0, %v49_v50 }
  0x41   :  { %925 = vmatmul.msk.f32.gmra.mxu2 %vm77_vm0, %v50_v55 }
  0x42   :  { %941 = vmatmul.msk.f32.gmra.mxu3 %vm77_vm0, %v50_v55 }
  0x43   :  { %893 = vmatmul.msk.f32.gmra.mxu0 %vm77_vm0, %v50_v55 }
  0x46   :  { %909 = vmatmul.msk.f32.gmra.mxu1 %vm77_vm0, %v50_v55 }
  0x49   :  { %926 = vmatmul.msk.f32.gmra.mxu2 %vm77_vm0, %v51_v60 }
  0x4a   :  { %942 = vmatmul.msk.f32.gmra.mxu3 %vm77_vm0, %v51_v60 }
  0x4b   :  { %894 = vmatmul.msk.f32.gmra.mxu0 %vm77_vm0, %v51_v60 }
  0x4e   :  { %910 = vmatmul.msk.f32.gmra.mxu1 %vm77_vm0, %v51_v60 }
  0x51   :  { %927 = vmatmul.msk.f32.gmra.mxu2 %vm77_vm0, %v52_v1 }
  0x52   :  { %943 = vmatmul.msk.f32.gmra.mxu3 %vm77_vm0, %v52_v1 }
  0x53   :  { %895 = vmatmul.msk.f32.gmra.mxu0 %vm77_vm0, %v52_v1 }
  0x56   :  { %911 = vmatmul.msk.f32.gmra.mxu1 %vm77_vm0, %v52_v1 }
  0x59   :  { %928 = vmatmul.msk.f32.gmra.mxu2 %vm77_vm0, %v53_v6 }
  0x5a   :  { %944 = vmatmul.msk.f32.gmra.mxu3 %vm77_vm0, %v53_v6 }
  0x5b   :  { %896 = vmatmul.msk.f32.gmra.mxu0 %vm77_vm0, %v53_v6 }
  0x5e   :  { %912 = vmatmul.msk.f32.gmra.mxu1 %vm77_vm0, %v53_v6 }
  0x61   :  { %929 = vmatmul.msk.f32.gmra.mxu2 %vm77_vm0, %v54_v11 }
  0x62   :  { %945 = vmatmul.msk.f32.gmra.mxu3 %vm77_vm0, %v54_v11 }
  0x63   :  { %897 = vmatmul.msk.f32.gmra.mxu0 %vm77_vm0, %v54_v11 }
  0x66   :  { %913 = vmatmul.msk.f32.gmra.mxu1 %vm77_vm0, %v54_v11 }
  0x69   :  { %930 = vmatmul.msk.f32.gmra.mxu2 %vm77_vm0, %v55_v19 }
  0x6a   :  { %946 = vmatmul.msk.f32.gmra.mxu3 %vm77_vm0, %v55_v19 }
  0x6b   :  { %898 = vmatmul.msk.f32.gmra.mxu0 %vm77_vm0, %v55_v19 }
  0x6e   :  { %914 = vmatmul.msk.f32.gmra.mxu1 %vm77_vm0, %v55_v19 }
  0x71   :  { %931 = vmatmul.msk.f32.gmra.mxu2 %vm77_vm0, %v56_v20 }
  0x72   :  { %947 = vmatmul.msk.f32.gmra.mxu3 %vm77_vm0, %v56_v20 }
  0x73   :  { %899 = vmatmul.msk.f32.gmra.mxu0 %vm77_vm0, %v56_v20 }
  0x76   :  { %915 = vmatmul.msk.f32.gmra.mxu1 %vm77_vm0, %v56_v20 }
  0x79   :  { %932 = vmatmul.msk.f32.gmra.mxu2 %vm77_vm0, %v57_v22 }
  0x7a   :  { %948 = vmatmul.msk.f32.gmra.mxu3 %vm77_vm0, %v57_v22 }
  0x7b   :  { %900 = vmatmul.msk.f32.gmra.mxu0 %vm77_vm0, %v57_v22 }
  0x7e   :  { %916 = vmatmul.msk.f32.gmra.mxu1 %vm77_vm0, %v57_v22 }
  0x81   :  { %933 = vmatmul.msk.f32.gmra.mxu2 %vm77_vm0, %v58_v23 }
  0x82   :  { %949 = vmatmul.msk.f32.gmra.mxu3 %vm77_vm0, %v58_v23 }
  0x83   :  { %901 = vmatmul.msk.f32.gmra.mxu0 %vm77_vm0, %v58_v23 }
  0x86   :  { %917 = vmatmul.msk.f32.gmra.mxu1 %vm77_vm0, %v58_v23 }
  0x88   :  { %v143_v27 = vpop.f32.mrf.mxu0 }
  0x89   :  { %v144_v29 = vadd.f32 %v143_v27, %v1166_v25 }
  0x8b   :  { %v208_v31 = vpop.f32.mrf.mxu1  ;;  %v386_v32 = vmax.f32 %v144_v29, 0.0 }
  0x8c   :  { %v209_v33 = vadd.f32 %v208_v31, %v1168_v26  ;;  %v273_v34 = vpop.f32.mrf.mxu2 }
  0x8d   :  { %v338_v35 = vpop.f32.mrf.mxu3  ;;  %v274_v36 = vadd.f32 %v273_v34, %v1170_v28  ;;  %534 = vmatmul.f32.vlgmr.msrb.gmra.mxu0 %v386_v32 }
  0x8e   :  { %v339_v37 = vadd.f32 %v338_v35, %v1173_v30  ;;  %v387_v38 = vmax.f32 %v209_v33, 0.0 }
  0x8f   :  { %v388_v39 = vmax.f32 %v274_v36, 0.0 }
  0x90   :  { %v389_v40 = vmax.f32 %v339_v37, 0.0  ;;  %599 = vmatmul.f32.vlgmr.msrb.gmra.mxu1 %v387_v38  ;;  %v146_v41 = vpop.f32.mrf.mxu0 }
  0x91   :  { %664 = vmatmul.f32.vlgmr.msrb.gmra.mxu2 %v388_v39  ;;  %v147_v42 = vadd.f32 %v146_v41, %v1166_v25 }
  0x92   :  { %729 = vmatmul.f32.vlgmr.msrb.gmra.mxu3 %v389_v40 }
  0x93   :  { %v211_v43 = vpop.f32.mrf.mxu1  ;;  %v390_v45 = vmax.f32 %v147_v42, 0.0 }
  0x94   :  { %v212_v44 = vadd.f32 %v211_v43, %v1168_v26  ;;  %v276_v46 = vpop.f32.mrf.mxu2 }
  0x95   :  { %v341_v47 = vpop.f32.mrf.mxu3  ;;  %v277_v48 = vadd.f32 %v276_v46, %v1170_v28  ;;  %537 = vmatmul.f32.gmra.mxu0 %v390_v45 }
  0x96   :  { %v342_v49 = vadd.f32 %v341_v47, %v1173_v30  ;;  %v391_v50 = vmax.f32 %v212_v44, 0.0 }
  0x97   :  { %v392_v51 = vmax.f32 %v277_v48, 0.0 }
  0x98   :  { %v393_v52 = vmax.f32 %v342_v49, 0.0  ;;  %602 = vmatmul.f32.gmra.mxu1 %v391_v50  ;;  %v149_v53 = vpop.f32.mrf.mxu0 }
  0x99   :  { %667 = vmatmul.f32.gmra.mxu2 %v392_v51  ;;  %v150_v54 = vadd.f32 %v149_v53, %v1166_v25 }
  0x9a   :  { %732 = vmatmul.f32.gmra.mxu3 %v393_v52 }
  0x9b   :  { %v214_v55 = vpop.f32.mrf.mxu1  ;;  %v394_v57 = vmax.f32 %v150_v54, 0.0 }
  0x9c   :  { %v215_v56 = vadd.f32 %v214_v55, %v1168_v26  ;;  %v279_v58 = vpop.f32.mrf.mxu2 }
  0x9d   :  { %v344_v59 = vpop.f32.mrf.mxu3  ;;  %v280_v60 = vadd.f32 %v279_v58, %v1170_v28  ;;  %540 = vmatmul.f32.gmra.mxu0 %v394_v57 }
  0x9e   :  { %v345_v61 = vadd.f32 %v344_v59, %v1173_v30  ;;  %v395_v62 = vmax.f32 %v215_v56, 0.0 }
  0x9f   :  { %v396_v63 = vmax.f32 %v280_v60, 0.0 }
  0xa0   :  { %v397_v0 = vmax.f32 %v345_v61, 0.0  ;;  %605 = vmatmul.f32.gmra.mxu1 %v395_v62  ;;  %v152_v1 = vpop.f32.mrf.mxu0 }
  0xa1   :  { %670 = vmatmul.f32.gmra.mxu2 %v396_v63  ;;  %v153_v2 = vadd.f32 %v152_v1, %v1166_v25 }
  0xa2   :  { %735 = vmatmul.f32.gmra.mxu3 %v397_v0 }
  0xa3   :  { %v217_v3 = vpop.f32.mrf.mxu1  ;;  %v398_v5 = vmax.f32 %v153_v2, 0.0 }
  0xa4   :  { %v218_v4 = vadd.f32 %v217_v3, %v1168_v26  ;;  %v282_v6 = vpop.f32.mrf.mxu2 }
  0xa5   :  { %v347_v7 = vpop.f32.mrf.mxu3  ;;  %v283_v8 = vadd.f32 %v282_v6, %v1170_v28  ;;  %543 = vmatmul.f32.gmra.mxu0 %v398_v5 }
  0xa6   :  { %v348_v9 = vadd.f32 %v347_v7, %v1173_v30  ;;  %v399_v10 = vmax.f32 %v218_v4, 0.0 }
  0xa7   :  { %v400_v11 = vmax.f32 %v283_v8, 0.0 }
  0xa8   :  { %v401_v12 = vmax.f32 %v348_v9, 0.0  ;;  %608 = vmatmul.f32.gmra.mxu1 %v399_v10  ;;  %v155_v13 = vpop.f32.mrf.mxu0 }
  0xa9   :  { %673 = vmatmul.f32.gmra.mxu2 %v400_v11  ;;  %v156_v14 = vadd.f32 %v155_v13, %v1166_v25 }
  0xaa   :  { %738 = vmatmul.f32.gmra.mxu3 %v401_v12 }
  0xab   :  { %v220_v15 = vpop.f32.mrf.mxu1  ;;  %v402_v17 = vmax.f32 %v156_v14, 0.0 }
  0xac   :  { %v221_v16 = vadd.f32 %v220_v15, %v1168_v26  ;;  %v285_v18 = vpop.f32.mrf.mxu2 }
  0xad   :  { %v350_v19 = vpop.f32.mrf.mxu3  ;;  %v286_v20 = vadd.f32 %v285_v18, %v1170_v28  ;;  %546 = vmatmul.f32.gmra.mxu0 %v402_v17 }
  0xae   :  { %v351_v21 = vadd.f32 %v350_v19, %v1173_v30  ;;  %v403_v22 = vmax.f32 %v221_v16, 0.0 }
  0xaf   :  { %v404_v23 = vmax.f32 %v286_v20, 0.0 }
  0xb0   :  { %v405_v24 = vmax.f32 %v351_v21, 0.0  ;;  %611 = vmatmul.f32.gmra.mxu1 %v403_v22  ;;  %v158_v27 = vpop.f32.mrf.mxu0 }
  0xb1   :  { %676 = vmatmul.f32.gmra.mxu2 %v404_v23  ;;  %v159_v29 = vadd.f32 %v158_v27, %v1166_v25 }
  0xb2   :  { %741 = vmatmul.f32.gmra.mxu3 %v405_v24 }
  0xb3   :  { %v223_v31 = vpop.f32.mrf.mxu1  ;;  %v406_v33 = vmax.f32 %v159_v29, 0.0 }
  0xb4   :  { %v224_v32 = vadd.f32 %v223_v31, %v1168_v26  ;;  %v288_v34 = vpop.f32.mrf.mxu2 }
  0xb5   :  { %v353_v35 = vpop.f32.mrf.mxu3  ;;  %v289_v36 = vadd.f32 %v288_v34, %v1170_v28  ;;  %549 = vmatmul.f32.gmra.mxu0 %v406_v33 }
  0xb6   :  { %v354_v37 = vadd.f32 %v353_v35, %v1173_v30  ;;  %v407_v38 = vmax.f32 %v224_v32, 0.0 }
  0xb7   :  { %v408_v39 = vmax.f32 %v289_v36, 0.0 }
  0xb8   :  { %v409_v40 = vmax.f32 %v354_v37, 0.0  ;;  %614 = vmatmul.f32.gmra.mxu1 %v407_v38  ;;  %v161_v41 = vpop.f32.mrf.mxu0 }
  0xb9   :  { %679 = vmatmul.f32.gmra.mxu2 %v408_v39  ;;  %v162_v42 = vadd.f32 %v161_v41, %v1166_v25 }
  0xba   :  { %744 = vmatmul.f32.gmra.mxu3 %v409_v40 }
  0xbb   :  { %v226_v43 = vpop.f32.mrf.mxu1  ;;  %v410_v45 = vmax.f32 %v162_v42, 0.0 }
  0xbc   :  { %v227_v44 = vadd.f32 %v226_v43, %v1168_v26  ;;  %v291_v46 = vpop.f32.mrf.mxu2 }
  0xbd   :  { %v356_v47 = vpop.f32.mrf.mxu3  ;;  %v292_v48 = vadd.f32 %v291_v46, %v1170_v28  ;;  %552 = vmatmul.f32.gmra.mxu0 %v410_v45 }
  0xbe   :  { %v357_v49 = vadd.f32 %v356_v47, %v1173_v30  ;;  %v411_v50 = vmax.f32 %v227_v44, 0.0 }
  0xbf   :  { %v412_v51 = vmax.f32 %v292_v48, 0.0 }
  0xc0   :  { %v413_v52 = vmax.f32 %v357_v49, 0.0  ;;  %617 = vmatmul.f32.gmra.mxu1 %v411_v50  ;;  %v164_v53 = vpop.f32.mrf.mxu0 }
  0xc1   :  { %682 = vmatmul.f32.gmra.mxu2 %v412_v51  ;;  %v165_v54 = vadd.f32 %v164_v53, %v1166_v25 }
  0xc2   :  { %747 = vmatmul.f32.gmra.mxu3 %v413_v52 }
  0xc3   :  { %v229_v55 = vpop.f32.mrf.mxu1  ;;  %v414_v57 = vmax.f32 %v165_v54, 0.0 }
  0xc4   :  { %v230_v56 = vadd.f32 %v229_v55, %v1168_v26  ;;  %v294_v58 = vpop.f32.mrf.mxu2 }
  0xc5   :  { %v359_v59 = vpop.f32.mrf.mxu3  ;;  %v295_v60 = vadd.f32 %v294_v58, %v1170_v28  ;;  %555 = vmatmul.f32.gmra.mxu0 %v414_v57 }
  0xc6   :  { %v360_v61 = vadd.f32 %v359_v59, %v1173_v30  ;;  %v415_v62 = vmax.f32 %v230_v56, 0.0 }
  0xc7   :  { %v416_v63 = vmax.f32 %v295_v60, 0.0 }
  0xc8   :  { %v417_v0 = vmax.f32 %v360_v61, 0.0  ;;  %620 = vmatmul.f32.gmra.mxu1 %v415_v62  ;;  %v167_v1 = vpop.f32.mrf.mxu0 }
  0xc9   :  { %685 = vmatmul.f32.gmra.mxu2 %v416_v63  ;;  %v168_v2 = vadd.f32 %v167_v1, %v1166_v25 }
  0xca   :  { %750 = vmatmul.f32.gmra.mxu3 %v417_v0 }
  0xcb   :  { %v232_v3 = vpop.f32.mrf.mxu1  ;;  %v418_v4 = vmax.f32 %v168_v2, 0.0 }
  0xcc   :  { %v233_v5 = vadd.f32 %v232_v3, %v1168_v26  ;;  %v297_v6 = vpop.f32.mrf.mxu2 }
  0xcd   :  { %v362_v7 = vpop.f32.mrf.mxu3  ;;  %v298_v8 = vadd.f32 %v297_v6, %v1170_v28  ;;  %558 = vmatmul.f32.gmra.mxu0 %v418_v4 }
  0xce   :  { %v363_v9 = vadd.f32 %v362_v7, %v1173_v30  ;;  %v419_v10 = vmax.f32 %v233_v5, 0.0 }
  0xcf   :  { %v420_v11 = vmax.f32 %v298_v8, 0.0 }
  0xd0   :  { %v421_v12 = vmax.f32 %v363_v9, 0.0  ;;  %623 = vmatmul.f32.gmra.mxu1 %v419_v10  ;;  %v170_v13 = vpop.f32.mrf.mxu0 }
  0xd1   :  { %688 = vmatmul.f32.gmra.mxu2 %v420_v11  ;;  %v171_v14 = vadd.f32 %v170_v13, %v1166_v25 }
  0xd2   :  { %753 = vmatmul.f32.gmra.mxu3 %v421_v12 }
  0xd3   :  { %v235_v15 = vpop.f32.mrf.mxu1  ;;  %v422_v16 = vmax.f32 %v171_v14, 0.0 }
  0xd4   :  { %v236_v17 = vadd.f32 %v235_v15, %v1168_v26  ;;  %v300_v18 = vpop.f32.mrf.mxu2 }
  0xd5   :  { %v365_v19 = vpop.f32.mrf.mxu3  ;;  %v301_v20 = vadd.f32 %v300_v18, %v1170_v28  ;;  %561 = vmatmul.f32.gmra.mxu0 %v422_v16 }
  0xd6   :  { %v366_v21 = vadd.f32 %v365_v19, %v1173_v30  ;;  %v423_v22 = vmax.f32 %v236_v17, 0.0 }
  0xd7   :  { %v424_v23 = vmax.f32 %v301_v20, 0.0 }
  0xd8   :  { %v425_v24 = vmax.f32 %v366_v21, 0.0  ;;  %626 = vmatmul.f32.gmra.mxu1 %v423_v22  ;;  %v173_v27 = vpop.f32.mrf.mxu0 }
  0xd9   :  { %691 = vmatmul.f32.gmra.mxu2 %v424_v23  ;;  %v174_v29 = vadd.f32 %v173_v27, %v1166_v25 }
  0xda   :  { %756 = vmatmul.f32.gmra.mxu3 %v425_v24 }
  0xdb   :  { %v238_v31 = vpop.f32.mrf.mxu1  ;;  %v426_v32 = vmax.f32 %v174_v29, 0.0 }
  0xdc   :  { %v239_v33 = vadd.f32 %v238_v31, %v1168_v26  ;;  %v303_v34 = vpop.f32.mrf.mxu2 }
  0xdd   :  { %v368_v35 = vpop.f32.mrf.mxu3  ;;  %v304_v36 = vadd.f32 %v303_v34, %v1170_v28  ;;  %564 = vmatmul.f32.gmra.mxu0 %v426_v32 }
  0xde   :  { %v369_v37 = vadd.f32 %v368_v35, %v1173_v30  ;;  %v427_v38 = vmax.f32 %v239_v33, 0.0 }
  0xdf   :  { %v428_v39 = vmax.f32 %v304_v36, 0.0 }
  0xe0   :  { %v429_v40 = vmax.f32 %v369_v37, 0.0  ;;  %629 = vmatmul.f32.gmra.mxu1 %v427_v38  ;;  %v176_v41 = vpop.f32.mrf.mxu0 }
  0xe1   :  { %694 = vmatmul.f32.gmra.mxu2 %v428_v39  ;;  %v177_v42 = vadd.f32 %v176_v41, %v1166_v25 }
  0xe2   :  { %759 = vmatmul.f32.gmra.mxu3 %v429_v40 }
  0xe3   :  { %v241_v43 = vpop.f32.mrf.mxu1  ;;  %v430_v44 = vmax.f32 %v177_v42, 0.0 }
  0xe4   :  { %v242_v45 = vadd.f32 %v241_v43, %v1168_v26  ;;  %v306_v46 = vpop.f32.mrf.mxu2 }
  0xe5   :  { %v371_v47 = vpop.f32.mrf.mxu3  ;;  %v307_v48 = vadd.f32 %v306_v46, %v1170_v28  ;;  %567 = vmatmul.f32.gmra.mxu0 %v430_v44 }
  0xe6   :  { %v372_v49 = vadd.f32 %v371_v47, %v1173_v30  ;;  %v431_v50 = vmax.f32 %v242_v45, 0.0 }
  0xe7   :  { %v432_v51 = vmax.f32 %v307_v48, 0.0 }
  0xe8   :  { %v433_v52 = vmax.f32 %v372_v49, 0.0  ;;  %632 = vmatmul.f32.gmra.mxu1 %v431_v50  ;;  %v179_v53 = vpop.f32.mrf.mxu0  ;;  %v1248_v49 = vld [vmem:[%s1352_s5] ss:$0 sm:$0xff] }
  0xe9   :  { %697 = vmatmul.f32.gmra.mxu2 %v432_v51  ;;  %v180_v54 = vadd.f32 %v179_v53, %v1166_v25 }
  0xea   :  { %762 = vmatmul.f32.gmra.mxu3 %v433_v52 }
  0xeb   :  { %v244_v55 = vpop.f32.mrf.mxu1  ;;  %v434_v56 = vmax.f32 %v180_v54, 0.0 }
  0xec   :  { %v245_v57 = vadd.f32 %v244_v55, %v1168_v26  ;;  %v309_v58 = vpop.f32.mrf.mxu2 }
  0xed   :  { %v374_v59 = vpop.f32.mrf.mxu3  ;;  %v310_v60 = vadd.f32 %v309_v58, %v1170_v28  ;;  %570 = vmatmul.f32.gmra.mxu0 %v434_v56 }
  0xee   :  { %v375_v61 = vadd.f32 %v374_v59, %v1173_v30  ;;  %v435_v62 = vmax.f32 %v245_v57, 0.0 }
  0xef   :  { %v436_v63 = vmax.f32 %v310_v60, 0.0 }
  0xf0   :  { %v437_v0 = vmax.f32 %v375_v61, 0.0  ;;  %635 = vmatmul.f32.gmra.mxu1 %v435_v62  ;;  %v182_v1 = vpop.f32.mrf.mxu0 }
  0xf1   :  { %700 = vmatmul.f32.gmra.mxu2 %v436_v63  ;;  %v183_v2 = vadd.f32 %v182_v1, %v1166_v25 }
  0xf2   :  { %765 = vmatmul.f32.gmra.mxu3 %v437_v0 }
  0xf3   :  { %v247_v3 = vpop.f32.mrf.mxu1  ;;  %v438_v4 = vmax.f32 %v183_v2, 0.0 }
  0xf4   :  { %v248_v5 = vadd.f32 %v247_v3, %v1168_v26  ;;  %v312_v6 = vpop.f32.mrf.mxu2 }
  0xf5   :  { %v377_v7 = vpop.f32.mrf.mxu3  ;;  %v313_v8 = vadd.f32 %v312_v6, %v1170_v28  ;;  %573 = vmatmul.f32.gmra.mxu0 %v438_v4 }
  0xf6   :  { %v378_v9 = vadd.f32 %v377_v7, %v1173_v30  ;;  %v439_v10 = vmax.f32 %v248_v5, 0.0 }
  0xf7   :  { %v440_v11 = vmax.f32 %v313_v8, 0.0 }
  0xf8   :  { %v441_v12 = vmax.f32 %v378_v9, 0.0  ;;  %638 = vmatmul.f32.gmra.mxu1 %v439_v10  ;;  %v185_v13 = vpop.f32.mrf.mxu0 }
  0xf9   :  { %703 = vmatmul.f32.gmra.mxu2 %v440_v11  ;;  %v186_v14 = vadd.f32 %v185_v13, %v1166_v25 }
  0xfa   :  { %768 = vmatmul.f32.gmra.mxu3 %v441_v12 }
  0xfb   :  { %v250_v15 = vpop.f32.mrf.mxu1  ;;  %v442_v16 = vmax.f32 %v186_v14, 0.0 }
  0xfc   :  { %v251_v17 = vadd.f32 %v250_v15, %v1168_v26  ;;  %v315_v18 = vpop.f32.mrf.mxu2 }
  0xfd   :  { %v380_v19 = vpop.f32.mrf.mxu3  ;;  %v316_v20 = vadd.f32 %v315_v18, %v1170_v28  ;;  %576 = vmatmul.f32.gmra.mxu0 %v442_v16 }
  0xfe   :  { %v381_v21 = vadd.f32 %v380_v19, %v1173_v30  ;;  %v443_v22 = vmax.f32 %v251_v17, 0.0 }
  0xff   :  { %v444_v23 = vmax.f32 %v316_v20, 0.0 }
 0x100   :  { %v445_v24 = vmax.f32 %v381_v21, 0.0  ;;  %641 = vmatmul.f32.gmra.mxu1 %v443_v22  ;;  %v188_v27 = vpop.f32.mrf.mxu0 }
 0x101   :  { %706 = vmatmul.f32.gmra.mxu2 %v444_v23  ;;  %v189_v29 = vadd.f32 %v188_v27, %v1166_v25  ;;  %v1241_v25 = vld [vmem:[%s1351_s4] ss:$0 sm:$0xff] }
 0x102   :  { %771 = vmatmul.f32.gmra.mxu3 %v445_v24 }
 0x103   :  { %v253_v31 = vpop.f32.mrf.mxu1  ;;  %v446_v32 = vmax.f32 %v189_v29, 0.0 }
 0x104   :  { %v254_v33 = vadd.f32 %v253_v31, %v1168_v26  ;;  %v318_v34 = vpop.f32.mrf.mxu2 }
 0x105   :  { %v383_v35 = vpop.f32.mrf.mxu3  ;;  %v319_v36 = vadd.f32 %v318_v34, %v1170_v28  ;;  %579 = vmatmul.f32.gmra.mxu0 %v446_v32 }
 0x106   :  { %v384_v37 = vadd.f32 %v383_v35, %v1173_v30  ;;  %v447_v38 = vmax.f32 %v254_v33, 0.0 }
 0x107   :  { %v448_v39 = vmax.f32 %v319_v36, 0.0 }
 0x108   :  { %v449_v40 = vmax.f32 %v384_v37, 0.0  ;;  %644 = vmatmul.f32.gmra.mxu1 %v447_v38 }
 0x109   :  { %709 = vmatmul.f32.gmra.mxu2 %v448_v39 }
 0x10a   :  { %774 = vmatmul.f32.gmra.mxu3 %v449_v40  ;;  %v535_v41 = vpop.f32.mrf.mxu0 }
 0x10b   :  { %v536_v42 = vadd.f32 %v1241_v25, %v535_v41 }
 0x10d   :  { %v600_v26 = vpop.f32.mrf.mxu1 }
 0x10e   :  { %v601_v43 = vadd.f32 %v600_v26, %v536_v42 }
 0x112   :  { %v538_v28 = vpop.f32.mrf.mxu0 }
 0x113   :  { %v539_v46 = vadd.f32 %v1241_v25, %v538_v28 }
 0x114   :  { %v665_v44 = vpop.f32.mrf.mxu2 }
 0x115   :  { %v730_v30 = vpop.f32.mrf.mxu3  ;;  %v666_v45 = vadd.f32 %v665_v44, %v601_v43  ;;  %v603_v47 = vpop.f32.mrf.mxu1 }
 0x116   :  { %v604_v51 = vadd.f32 %v603_v47, %v539_v46 }
 0x117   :  { %v731_v48 = vadd.f32 %v730_v30, %v666_v45 }
 0x119   :  { %v778_v50 = vmax.f32 %v731_v48, 0.0 }
 0x11a   :  { %v541_v52 = vpop.f32.mrf.mxu0 }
 0x11b   :  { %v798_v53 = vmul.f32 %v1248_v49, %v778_v50  ;;  %v542_v57 = vadd.f32 %v1241_v25, %v541_v52 }
 0x11c   :  { %v668_v54 = vpop.f32.mrf.mxu2 }
 0x11d   :  { %v733_v55 = vpop.f32.mrf.mxu3  ;;  %v669_v56 = vadd.f32 %v668_v54, %v604_v51  ;;  %814 = vadd.xlane.f32.xlu0 %v798_v53  ;;  %v606_v58 = vpop.f32.mrf.mxu1 }
 0x11e   :  { %v607_v61 = vadd.f32 %v606_v58, %v542_v57 }
 0x11f   :  { %v734_v59 = vadd.f32 %v733_v55, %v669_v56 }
 0x121   :  { %v779_v60 = vmax.f32 %v734_v59, 0.0 }
 0x122   :  { %v544_v62 = vpop.f32.mrf.mxu0 }
 0x123   :  { %v799_v63 = vmul.f32 %v1248_v49, %v779_v60  ;;  %v545_v3 = vadd.f32 %v1241_v25, %v544_v62 }
 0x124   :  { %v671_v0 = vpop.f32.mrf.mxu2 }
 0x125   :  { %v736_v1 = vpop.f32.mrf.mxu3  ;;  %v672_v2 = vadd.f32 %v671_v0, %v607_v61  ;;  %816 = vadd.xlane.f32.xlu0 %v799_v63  ;;  %v609_v4 = vpop.f32.mrf.mxu1 }
 0x126   :  { %v610_v7 = vadd.f32 %v609_v4, %v545_v3 }
 0x127   :  { %v737_v5 = vadd.f32 %v736_v1, %v672_v2 }
 0x129   :  { %v780_v6 = vmax.f32 %v737_v5, 0.0 }
 0x12a   :  { %v547_v8 = vpop.f32.mrf.mxu0 }
 0x12b   :  { %v800_v9 = vmul.f32 %v1248_v49, %v780_v6  ;;  %v548_v13 = vadd.f32 %v1241_v25, %v547_v8 }
 0x12c   :  { %v674_v10 = vpop.f32.mrf.mxu2 }
 0x12d   :  { %v739_v11 = vpop.f32.mrf.mxu3  ;;  %v675_v12 = vadd.f32 %v674_v10, %v610_v7  ;;  %818 = vadd.xlane.f32.xlu1 %v800_v9  ;;  %v612_v14 = vpop.f32.mrf.mxu1 }
 0x12e   :  { %v613_v17 = vadd.f32 %v612_v14, %v548_v13 }
 0x12f   :  { %v740_v15 = vadd.f32 %v739_v11, %v675_v12 }
 0x131   :  { %v781_v16 = vmax.f32 %v740_v15, 0.0 }
 0x132   :  { %v550_v18 = vpop.f32.mrf.mxu0 }
 0x133   :  { %v801_v19 = vmul.f32 %v1248_v49, %v781_v16  ;;  %v551_v23 = vadd.f32 %v1241_v25, %v550_v18 }
 0x134   :  { %v677_v20 = vpop.f32.mrf.mxu2 }
 0x135   :  { %v742_v21 = vpop.f32.mrf.mxu3  ;;  %v678_v22 = vadd.f32 %v677_v20, %v613_v17  ;;  %820 = vadd.xlane.f32.xlu1 %v801_v19  ;;  %v615_v24 = vpop.f32.mrf.mxu1 }
 0x136   :  { %v616_v31 = vadd.f32 %v615_v24, %v551_v23 }
 0x137   :  { %v743_v27 = vadd.f32 %v742_v21, %v678_v22 }
 0x139   :  { %v782_v29 = vmax.f32 %v743_v27, 0.0 }
 0x13a   :  { %v553_v32 = vpop.f32.mrf.mxu0 }
 0x13b   :  { %v802_v33 = vmul.f32 %v1248_v49, %v782_v29  ;;  %v554_v37 = vadd.f32 %v1241_v25, %v553_v32 }
 0x13c   :  { %v680_v34 = vpop.f32.mrf.mxu2 }
 0x13d   :  { %v745_v35 = vpop.f32.mrf.mxu3  ;;  %v681_v36 = vadd.f32 %v680_v34, %v616_v31  ;;  %822 = vadd.xlane.f32.xlu2 %v802_v33  ;;  %v618_v38 = vpop.f32.mrf.mxu1 }
 0x13e   :  { %v619_v41 = vadd.f32 %v618_v38, %v554_v37 }
 0x13f   :  { %v746_v39 = vadd.f32 %v745_v35, %v681_v36 }
 0x141   :  { %v783_v40 = vmax.f32 %v746_v39, 0.0 }
 0x142   :  { %v556_v26 = vpop.f32.mrf.mxu0 }
 0x143   :  { %v803_v42 = vmul.f32 %v1248_v49, %v783_v40  ;;  %v557_v30 = vadd.f32 %v1241_v25, %v556_v26 }
 0x144   :  { %v683_v43 = vpop.f32.mrf.mxu2 }
 0x145   :  { %v748_v28 = vpop.f32.mrf.mxu3  ;;  %v684_v44 = vadd.f32 %v683_v43, %v619_v41  ;;  %824 = vadd.xlane.f32.xlu2 %v803_v42  ;;  %v621_v45 = vpop.f32.mrf.mxu1 }
 0x146   :  { %v622_v48 = vadd.f32 %v621_v45, %v557_v30 }
 0x147   :  { %v749_v46 = vadd.f32 %v748_v28, %v684_v44 }
 0x149   :  { %v784_v47 = vmax.f32 %v749_v46, 0.0 }
 0x14a   :  { %v559_v50 = vpop.f32.mrf.mxu0 }
 0x14b   :  { %v804_v51 = vmul.f32 %v1248_v49, %v784_v47  ;;  %v560_v55 = vadd.f32 %v1241_v25, %v559_v50 }
 0x14c   :  { %v686_v52 = vpop.f32.mrf.mxu2 }
 0x14d   :  { %v751_v53 = vpop.f32.mrf.mxu3  ;;  %v687_v54 = vadd.f32 %v686_v52, %v622_v48  ;;  %826 = vadd.xlane.f32.xlu0 %v804_v51  ;;  %v624_v56 = vpop.f32.mrf.mxu1 }
 0x14e   :  { %v625_v59 = vadd.f32 %v624_v56, %v560_v55 }
 0x14f   :  { %v752_v57 = vadd.f32 %v751_v53, %v687_v54 }
 0x151   :  { %v785_v58 = vmax.f32 %v752_v57, 0.0 }
 0x152   :  { %v562_v60 = vpop.f32.mrf.mxu0 }
 0x153   :  { %v805_v61 = vmul.f32 %v1248_v49, %v785_v58  ;;  %v563_v1 = vadd.f32 %v1241_v25, %v562_v60 }
 0x154   :  { %v689_v62 = vpop.f32.mrf.mxu2 }
 0x155   :  { %v754_v63 = vpop.f32.mrf.mxu3  ;;  %v690_v0 = vadd.f32 %v689_v62, %v625_v59  ;;  %828 = vadd.xlane.f32.xlu1 %v805_v61  ;;  %v627_v2 = vpop.f32.mrf.mxu1 }
 0x156   :  { %v628_v5 = vadd.f32 %v627_v2, %v563_v1 }
 0x157   :  { %v755_v3 = vadd.f32 %v754_v63, %v690_v0 }
 0x159   :  { %v786_v4 = vmax.f32 %v755_v3, 0.0 }
 0x15a   :  { %v565_v6 = vpop.f32.mrf.mxu0 }
 0x15b   :  { %v806_v7 = vmul.f32 %v1248_v49, %v786_v4  ;;  %v566_v11 = vadd.f32 %v1241_v25, %v565_v6 }
 0x15c   :  { %v692_v8 = vpop.f32.mrf.mxu2 }
 0x15d   :  { %v757_v9 = vpop.f32.mrf.mxu3  ;;  %v693_v10 = vadd.f32 %v692_v8, %v628_v5  ;;  %830 = vadd.xlane.f32.xlu2 %v806_v7  ;;  %v630_v12 = vpop.f32.mrf.mxu1  ;;  %v847_v8 = vstv %s1353_s6 }
 0x15e   :  { %v631_v15 = vadd.f32 %v630_v12, %v566_v11 }
 0x15f   :  { %v758_v13 = vadd.f32 %v757_v9, %v693_v10 }
 0x161   :  { %v787_v14 = vmax.f32 %v758_v13, 0.0 }
 0x162   :  { %v568_v16 = vpop.f32.mrf.mxu0 }
 0x163   :  { %v807_v17 = vmul.f32 %v1248_v49, %v787_v14  ;;  %v569_v21 = vadd.f32 %v1241_v25, %v568_v16 }
 0x164   :  { %v695_v18 = vpop.f32.mrf.mxu2 }
 0x165   :  { %v760_v19 = vpop.f32.mrf.mxu3  ;;  %v696_v20 = vadd.f32 %v695_v18, %v631_v15  ;;  %832 = vadd.xlane.f32.xlu0 %v807_v17  ;;  %v633_v22 = vpop.f32.mrf.mxu1 }
 0x166   :  { %v634_v27 = vadd.f32 %v633_v22, %v569_v21 }
 0x167   :  { %v761_v23 = vadd.f32 %v760_v19, %v696_v20 }
 0x169   :  { %v788_v24 = vmax.f32 %v761_v23, 0.0 }
 0x16a   :  { %v571_v29 = vpop.f32.mrf.mxu0 }
 0x16b   :  { %v808_v31 = vmul.f32 %v1248_v49, %v788_v24  ;;  %v572_v35 = vadd.f32 %v1241_v25, %v571_v29 }
 0x16c   :  { %v698_v32 = vpop.f32.mrf.mxu2 }
 0x16d   :  { %v763_v33 = vpop.f32.mrf.mxu3  ;;  %v699_v34 = vadd.f32 %v698_v32, %v634_v27  ;;  %834 = vadd.xlane.f32.xlu1 %v808_v31  ;;  %v636_v36 = vpop.f32.mrf.mxu1 }
 0x16e   :  { %v637_v39 = vadd.f32 %v636_v36, %v572_v35 }
 0x16f   :  { %v764_v37 = vadd.f32 %v763_v33, %v699_v34 }
 0x171   :  { %v789_v38 = vmax.f32 %v764_v37, 0.0 }
 0x172   :  { %v574_v40 = vpop.f32.mrf.mxu0 }
 0x173   :  { %v809_v41 = vmul.f32 %v1248_v49, %v789_v38  ;;  %v575_v28 = vadd.f32 %v1241_v25, %v574_v40 }
 0x174   :  { %v701_v26 = vpop.f32.mrf.mxu2 }
 0x175   :  { %v766_v42 = vpop.f32.mrf.mxu3  ;;  %v702_v43 = vadd.f32 %v701_v26, %v637_v39  ;;  %836 = vadd.xlane.f32.xlu2 %v809_v41  ;;  %v639_v44 = vpop.f32.mrf.mxu1 }
 0x176   :  { %v640_v46 = vadd.f32 %v639_v44, %v575_v28 }
 0x177   :  { %v767_v30 = vadd.f32 %v766_v42, %v702_v43 }
 0x179   :  { %v790_v45 = vmax.f32 %v767_v30, 0.0 }
 0x17a   :  { %v577_v47 = vpop.f32.mrf.mxu0 }
 0x17b   :  { %v810_v48 = vmul.f32 %v1248_v49, %v790_v45  ;;  %v578_v53 = vadd.f32 %v1241_v25, %v577_v47 }
 0x17c   :  { %v704_v50 = vpop.f32.mrf.mxu2 }
 0x17d   :  { %v769_v51 = vpop.f32.mrf.mxu3  ;;  %v705_v52 = vadd.f32 %v704_v50, %v640_v46  ;;  %838 = vadd.xlane.f32.xlu0 %v810_v48  ;;  %v642_v54 = vpop.f32.mrf.mxu1 }
 0x17e   :  { %v643_v57 = vadd.f32 %v642_v54, %v578_v53 }
 0x17f   :  { %v770_v55 = vadd.f32 %v769_v51, %v705_v52 }
 0x181   :  { %v791_v56 = vmax.f32 %v770_v55, 0.0 }
 0x182   :  { %v580_v58 = vpop.f32.mrf.mxu0 }
 0x183   :  { %v811_v59 = vmul.f32 %v1248_v49, %v791_v56  ;;  %v581_v63 = vadd.f32 %v1241_v25, %v580_v58 }
 0x184   :  { %v707_v60 = vpop.f32.mrf.mxu2 }
 0x185   :  { %v772_v61 = vpop.f32.mrf.mxu3  ;;  %v708_v62 = vadd.f32 %v707_v60, %v643_v57  ;;  %840 = vadd.xlane.f32.xlu1 %v811_v59  ;;  %v645_v0 = vpop.f32.mrf.mxu1 }
 0x186   :  { %v646_v3 = vadd.f32 %v645_v0, %v581_v63 }
 0x187   :  { %v773_v1 = vadd.f32 %v772_v61, %v708_v62 }
 0x189   :  { %v792_v2 = vmax.f32 %v773_v1, 0.0 }
 0x18b   :  { %v812_v4 = vmul.f32 %v1248_v49, %v792_v2 }
 0x18c   :  { %v710_v5 = vpop.f32.mrf.mxu2 }
 0x18d   :  { %v775_v6 = vpop.f32.mrf.mxu3  ;;  %v711_v7 = vadd.f32 %v710_v5, %v646_v3  ;;  %842 = vadd.xlane.f32.xlu2 %v812_v4 }
 0x18f   :  { %v776_v9 = vadd.f32 %v775_v6, %v711_v7 }
 0x190   :  { %v815_v10 = vpop.xlane.xlu0 %814 }
 0x191   :  { %v793_v11 = vmax.f32 %v776_v9, 0.0  ;;  %v848_v12 = vadd.f32 %v847_v8, %v815_v10 }
 0x193   :  { %865 = vst.msk [vmem:[%s1354_s7] sm:$0xff] %vm864_vm1, %v848_v12  ;;  %v813_v25 = vmul.f32 %v1248_v49, %v793_v11 }
 0x195   :  { %844 = vadd.xlane.f32.xlu0 %v813_v25 }
 0x198   :  { %v817_v13 = vpop.xlane.xlu0 %816 }
 0x199   :  { %v849_v14 = vadd.f32 %v847_v8, %v817_v13 }
 0x19b   :  { %866 = vst.msk [vmem:[%s1354_s7 + $0x8] sm:$0xff] %vm864_vm1, %v849_v14 }
 0x1a0   :  { %v819_v15 = vpop.xlane.xlu1 %818 }
 0x1a1   :  { %v850_v16 = vadd.f32 %v847_v8, %v819_v15 }
 0x1a3   :  { %867 = vst.msk [vmem:[%s1354_s7 + $0x10] sm:$0xff] %vm864_vm1, %v850_v16 }
 0x1a8   :  { %v821_v17 = vpop.xlane.xlu1 %820 }
 0x1a9   :  { %v851_v18 = vadd.f32 %v847_v8, %v821_v17 }
 0x1ab   :  { %868 = vst.msk [vmem:[%s1354_s7 + $0x18] sm:$0xff] %vm864_vm1, %v851_v18 }
 0x1b0   :  { %v823_v49 = vpop.xlane.xlu2 %822 }
 0x1b1   :  { %v852_v19 = vadd.f32 %v847_v8, %v823_v49 }
 0x1b3   :  { %869 = vst.msk [vmem:[%s1354_s7 + $0x20] sm:$0xff] %vm864_vm1, %v852_v19 }
 0x1b8   :  { %v825_v20 = vpop.xlane.xlu2 %824 }
 0x1b9   :  { %v853_v21 = vadd.f32 %v847_v8, %v825_v20 }
 0x1bb   :  { %870 = vst.msk [vmem:[%s1354_s7 + $0x28] sm:$0xff] %vm864_vm1, %v853_v21 }
 0x1c0   :  { %v827_v22 = vpop.xlane.xlu0 %826 }
 0x1c1   :  { %v854_v23 = vadd.f32 %v847_v8, %v827_v22 }
 0x1c3   :  { %871 = vst.msk [vmem:[%s1354_s7 + $0x30] sm:$0xff] %vm864_vm1, %v854_v23 }
 0x1c8   :  { %v829_v24 = vpop.xlane.xlu1 %828 }
 0x1c9   :  { %v855_v27 = vadd.f32 %v847_v8, %v829_v24 }
 0x1cb   :  { %872 = vst.msk [vmem:[%s1354_s7 + $0x38] sm:$0xff] %vm864_vm1, %v855_v27 }
 0x1d0   :  { %v831_v29 = vpop.xlane.xlu2 %830 }
 0x1d1   :  { %v856_v31 = vadd.f32 %v847_v8, %v831_v29 }
 0x1d3   :  { %873 = vst.msk [vmem:[%s1354_s7 + $0x40] sm:$0xff] %vm864_vm1, %v856_v31 }
 0x1d8   :  { %v833_v32 = vpop.xlane.xlu0 %832 }
 0x1d9   :  { %v857_v33 = vadd.f32 %v847_v8, %v833_v32 }
 0x1db   :  { %874 = vst.msk [vmem:[%s1354_s7 + $0x48] sm:$0xff] %vm864_vm1, %v857_v33 }
 0x1e0   :  { %v835_v34 = vpop.xlane.xlu1 %834 }
 0x1e1   :  { %v858_v35 = vadd.f32 %v847_v8, %v835_v34 }
 0x1e3   :  { %875 = vst.msk [vmem:[%s1354_s7 + $0x50] sm:$0xff] %vm864_vm1, %v858_v35 }
 0x1e8   :  { %v837_v36 = vpop.xlane.xlu2 %836 }
 0x1e9   :  { %v859_v37 = vadd.f32 %v847_v8, %v837_v36 }
 0x1eb   :  { %876 = vst.msk [vmem:[%s1354_s7 + $0x58] sm:$0xff] %vm864_vm1, %v859_v37 }
 0x1f0   :  { %v839_v38 = vpop.xlane.xlu0 %838 }
 0x1f1   :  { %v860_v39 = vadd.f32 %v847_v8, %v839_v38 }
 0x1f3   :  { %877 = vst.msk [vmem:[%s1354_s7 + $0x60] sm:$0xff] %vm864_vm1, %v860_v39 }
 0x1f8   :  { %v841_v40 = vpop.xlane.xlu1 %840 }
 0x1f9   :  { %v861_v41 = vadd.f32 %v847_v8, %v841_v40 }
 0x1fb   :  { %878 = vst.msk [vmem:[%s1354_s7 + $0x68] sm:$0xff] %vm864_vm1, %v861_v41 }
 0x200   :  { %v843_v26 = vpop.xlane.xlu2 %842 }
 0x201   :  { %v862_v42 = vadd.f32 %v847_v8, %v843_v26 }
 0x203   :  { %879 = vst.msk [vmem:[%s1354_s7 + $0x70] sm:$0xff] %vm864_vm1, %v862_v42 }
 0x208   :  { %v845_v43 = vpop.xlane.xlu0 %844 }
 0x209   :  { %v863_v28 = vadd.f32 %v847_v8, %v845_v43 }
 0x20b   :  { %880 = vst.msk [vmem:[%s1354_s7 + $0x78] sm:$0xff] %vm864_vm1, %v863_v28 }
 0x20c   :  { %885 = vsyncpa [#allocation4], 1 }

</bundles_post_ra>
